<compile_context>
chip_gen: v6e
topology: v6e:2x2x1
jax: 0.10.0
libtpu: 0.0.40
codegen_flags: <defaults>
</compile_context>

<pallas_src>
import functools

import jax
import jax.numpy as jnp
from jax import lax
from jax.experimental import pallas as pl
from jax.experimental.pallas import tpu as pltpu

HIDDEN = 32
DEFAULT_TILE_N = 1024  # rows per grid step; sweep 512-2048 for very large N


def _scorer_kernel(x_ref, w1_ref, b1_ref, w2_ref, b2_ref, w3t_ref, b3_ref, o_ref):
    """One row-tile of the 3-layer MLP; emits a lane-dense (1, tile_n) score row."""
    x = x_ref[...].astype(jnp.float32)                                    # (tile_n, D)
    h1 = jnp.dot(x, w1_ref[...], preferred_element_type=jnp.float32) + b1_ref[...]
    h1 = jnp.maximum(h1, 0.0)                                             # (tile_n, 32)
    h2 = jnp.dot(h1, w2_ref[...], preferred_element_type=jnp.float32) + b2_ref[...]
    h2 = jnp.maximum(h2, 0.0)                                             # (tile_n, 32)
    # Lane-dense final layer: contract h2's hidden axis against w3 so the row
    # index lands on lanes -> (1, tile_n); b3 added as a scalar from SMEM.
    scores = lax.dot_general(
        w3t_ref[...], h2,                                                 # (1,32),(tile_n,32)
        dimension_numbers=(((1,), (1,)), ((), ())),
        preferred_element_type=jnp.float32,
    ) + b3_ref[0]                                                         # (1, tile_n)
    o_ref[0] = scores.astype(o_ref.dtype)                                 # block (1,1,tile_n)


def _round_up(v, m):
    return ((v + m - 1) // m) * m


def _choose_tile(n, input_dim, tile_n):
    """Pick a row tile: as large as possible, VMEM-safe, lane-dense when N allows."""
    # Budget: double-buffered x tile (2 * 4B * tn * D) + double-buffered output
    # tile (2 * 4B * tn); weights are tiny and resident.  Keep well under the
    # scoped-VMEM floor of every generation (v5e 16 MiB default, v7x 64 MiB
    # physical) with headroom for Mosaic internal scratch.
    budget = 12 * 1024 * 1024
    per_row = 2 * 4 * (max(1, input_dim) + 1)
    max_rows = max(8, budget // per_row)
    tn = min(int(tile_n), max_rows)
    if n >= 128:
        # Multiple of 128 -> unmasked, fully lane-dense output stores.
        tn = min(tn, _round_up(n, 128))
        tn = max(128, (tn // 128) * 128)
    else:
        tn = min(tn, _round_up(n, 8))
        tn = max(8, (tn // 8) * 8)
    return tn


@functools.partial(jax.jit, static_argnames=("tile_n",))
def scorer_forward(x, params, tile_n=DEFAULT_TILE_N):
    """x: (..., input_dim) -> (..., 1), same semantics as Scorer.forward."""
    w1, b1, w2, b2, w3, b3 = params
    input_dim = w1.shape[0]
    lead_shape = x.shape[:-1]
    n = 1
    for s in lead_shape:
        n *= s
    # No pad, no astype: avoid a full extra HBM pass over x before the kernel.
    x2d = x.reshape(n, input_dim)

    tn = _choose_tile(n, input_dim, tile_n)
    num_tiles = pl.cdiv(n, tn)

    # Tiny layout plumbing so the last layer is lane-dense and b3 lives in SMEM.
    w3t = w3.reshape(1, HIDDEN).astype(jnp.float32)   # (1, 32)
    b3s = b3.reshape(1).astype(jnp.float32)           # (1,) scalar in SMEM

    out = pl.pallas_call(
        _scorer_kernel,
        out_shape=jax.ShapeDtypeStruct((num_tiles, 1, tn), jnp.float32),
        grid_spec=pltpu.PrefetchScalarGridSpec(
            num_scalar_prefetch=0,
            grid=(num_tiles,),
            in_specs=[
                pl.BlockSpec((tn, input_dim), lambda i: (i, 0)),          # x rows
                pl.BlockSpec((input_dim, HIDDEN), lambda i: (0, 0)),      # w1
                pl.BlockSpec((1, HIDDEN), lambda i: (0, 0)),              # b1
                pl.BlockSpec((HIDDEN, HIDDEN), lambda i: (0, 0)),         # w2
                pl.BlockSpec((1, HIDDEN), lambda i: (0, 0)),              # b2
                pl.BlockSpec((1, HIDDEN), lambda i: (0, 0)),              # w3 (transposed)
                pl.BlockSpec(memory_space=pltpu.MemorySpace.SMEM),        # b3 scalar
            ],
            out_specs=pl.BlockSpec((1, 1, tn), lambda i: (i, 0, 0)),      # lane-dense scores
        ),
        compiler_params=pltpu.CompilerParams(
            dimension_semantics=("parallel",),
            vmem_limit_bytes=32 * 1024 * 1024,
        ),
    )(x2d, w1, b1, w2, b2, w3t, b3s)

    out = out.reshape(num_tiles * tn)[:n]
    return out.reshape(lead_shape + (1,))


def init_scorer_params(input_dim, key):
    """Deterministic init matching PyTorch nn.Linear default (U[-1/sqrt(fan_in), ...])."""
    k = jax.random.split(key, 6)

    def lin(kw, kb, fan_in, fan_out):
        bound = 1.0 / jnp.sqrt(fan_in)
        w = jax.random.uniform(kw, (fan_in, fan_out), jnp.float32, -bound, bound)
        b = jax.random.uniform(kb, (1, fan_out), jnp.float32, -bound, bound)
        return w, b

    w1, b1 = lin(k[0], k[1], input_dim, HIDDEN)
    w2, b2 = lin(k[2], k[3], HIDDEN, HIDDEN)
    w3, b3 = lin(k[4], k[5], HIDDEN, 1)
    return (w1, b1, w2, b2, w3, b3)


# TODO(synk): generate_loss / pointwise_rmse and the meta_train loop (optimizer,
# numpy data sampling) are host-side training utilities, not part of forward;
# only Scorer.forward is implemented as a Pallas kernel here.

if __name__ == "__main__":
    key = jax.random.PRNGKey(0)
    k_x, k_p = jax.random.split(key)

    batch_size = 2
    list_size = 8
    input_dim = 4

    x = jax.random.normal(k_x, (batch_size, list_size, input_dim), jnp.float32)
    params = init_scorer_params(input_dim, k_p)

    out = scorer_forward(x, params)
    out = jax.block_until_ready(out)
    assert out.shape == (batch_size, list_size, 1), out.shape

    # Reference check with plain JAX to validate kernel semantics.
    w1, b1, w2, b2, w3, b3 = params
    ref = jnp.maximum(x.reshape(-1, input_dim) @ w1 + b1, 0.0)
    ref = jnp.maximum(ref @ w2 + b2, 0.0)
    ref = (ref @ w3 + b3).reshape(batch_size, list_size, 1)
    assert jnp.allclose(out, ref, atol=1e-5), float(jnp.max(jnp.abs(out - ref)))

    # Second check at a larger, non-tile-multiple N to exercise the ragged path.
    x_big = jax.random.normal(k_x, (7, 37, input_dim), jnp.float32)
    out_big = jax.block_until_ready(scorer_forward(x_big, params))
    ref_big = jnp.maximum(x_big.reshape(-1, input_dim) @ w1 + b1, 0.0)
    ref_big = jnp.maximum(ref_big @ w2 + b2, 0.0)
    ref_big = (ref_big @ w3 + b3).reshape(7, 37, 1)
    assert jnp.allclose(out_big, ref_big, atol=1e-5), float(
        jnp.max(jnp.abs(out_big - ref_big)))

    print("KERNEL_OK")
</pallas_src>

<mosaic_0001>
module attributes {stable_mosaic.version = 11 : i64} {
  func.func @_scorer_kernel(%arg0: i32, %arg1: memref<16x4xf32, #tpu.memory_space<vmem>>, %arg2: memref<4x32xf32, #tpu.memory_space<vmem>>, %arg3: memref<1x32xf32, #tpu.memory_space<vmem>>, %arg4: memref<32x32xf32, #tpu.memory_space<vmem>>, %arg5: memref<1x32xf32, #tpu.memory_space<vmem>>, %arg6: memref<1x32xf32, #tpu.memory_space<vmem>>, %arg7: memref<1xf32, #tpu.memory_space<smem>>, %arg8: memref<1x1x16xf32, #tpu.memory_space<vmem>>) attributes {dimension_semantics = [#tpu.dimension_semantics<parallel>], iteration_bounds = array<i64: 1>, scalar_prefetch = 0 : i64, scratch_operands = 0 : i64, tpu.core_type = #tpu.core_type<tc>, window_params = [{transform_indices = @transform_0, window_bounds = array<i64: 16, 4>}, {pipeline_mode = #tpu.pipeline_mode<synchronous>, transform_indices = @transform_1, window_bounds = array<i64: 4, 32>}, {pipeline_mode = #tpu.pipeline_mode<synchronous>, transform_indices = @transform_2, window_bounds = array<i64: 1, 32>}, {pipeline_mode = #tpu.pipeline_mode<synchronous>, transform_indices = @transform_3, window_bounds = array<i64: 32, 32>}, {pipeline_mode = #tpu.pipeline_mode<synchronous>, transform_indices = @transform_4, window_bounds = array<i64: 1, 32>}, {pipeline_mode = #tpu.pipeline_mode<synchronous>, transform_indices = @transform_5, window_bounds = array<i64: 1, 32>}, {transform_indices = @transform_6, window_bounds = array<i64: 1>}, {transform_indices = @transform_7, window_bounds = array<i64: 1, 1, 16>}]} {
    %c0 = arith.constant 0 : index
    %c0_0 = arith.constant 0 : index
    %0 = vector.load %arg1[%c0, %c0_0] : memref<16x4xf32, #tpu.memory_space<vmem>>, vector<16x4xf32>
    %c0_1 = arith.constant 0 : index
    %c0_2 = arith.constant 0 : index
    %1 = vector.load %arg2[%c0_1, %c0_2] : memref<4x32xf32, #tpu.memory_space<vmem>>, vector<4x32xf32>
    %cst = arith.constant dense<0.000000e+00> : vector<16x32xf32>
    %2 = tpu.matmul %0, %1, %cst {dimension_numbers = #tpu.dot_dimension_numbers<[1], [0], [0], [1], [0, 0, 1, 1], [], []>} : vector<16x4xf32>, vector<4x32xf32>, vector<16x32xf32> -> vector<16x32xf32>
    %c0_3 = arith.constant 0 : index
    %c0_4 = arith.constant 0 : index
    %3 = vector.load %arg3[%c0_3, %c0_4] : memref<1x32xf32, #tpu.memory_space<vmem>>, vector<1x32xf32>
    %4 = vector.broadcast %3 : vector<1x32xf32> to vector<16x32xf32>
    %5 = arith.addf %2, %4 : vector<16x32xf32>
    %cst_5 = arith.constant 0.000000e+00 : f32
    %6 = vector.broadcast %cst_5 : f32 to vector<16x32xf32>
    %7 = arith.maximumf %5, %6 : vector<16x32xf32>
    %c0_6 = arith.constant 0 : index
    %c0_7 = arith.constant 0 : index
    %8 = vector.load %arg4[%c0_6, %c0_7] : memref<32x32xf32, #tpu.memory_space<vmem>>, vector<32x32xf32>
    %cst_8 = arith.constant dense<0.000000e+00> : vector<16x32xf32>
    %9 = tpu.matmul %7, %8, %cst_8 {dimension_numbers = #tpu.dot_dimension_numbers<[1], [0], [0], [1], [0, 0, 1, 1], [], []>} : vector<16x32xf32>, vector<32x32xf32>, vector<16x32xf32> -> vector<16x32xf32>
    %c0_9 = arith.constant 0 : index
    %c0_10 = arith.constant 0 : index
    %10 = vector.load %arg5[%c0_9, %c0_10] : memref<1x32xf32, #tpu.memory_space<vmem>>, vector<1x32xf32>
    %11 = vector.broadcast %10 : vector<1x32xf32> to vector<16x32xf32>
    %12 = arith.addf %9, %11 : vector<16x32xf32>
    %cst_11 = arith.constant 0.000000e+00 : f32
    %13 = vector.broadcast %cst_11 : f32 to vector<16x32xf32>
    %14 = arith.maximumf %12, %13 : vector<16x32xf32>
    %c0_12 = arith.constant 0 : index
    %c0_13 = arith.constant 0 : index
    %15 = vector.load %arg6[%c0_12, %c0_13] : memref<1x32xf32, #tpu.memory_space<vmem>>, vector<1x32xf32>
    %cst_14 = arith.constant dense<0.000000e+00> : vector<1x16xf32>
    %16 = tpu.matmul %15, %14, %cst_14 {dimension_numbers = #tpu.dot_dimension_numbers<[1], [1], [0], [0], [0, 0, 1, 0], [], []>} : vector<1x32xf32>, vector<16x32xf32>, vector<1x16xf32> -> vector<1x16xf32>
    %c0_15 = arith.constant 0 : index
    %17 = memref.load %arg7[%c0_15] : memref<1xf32, #tpu.memory_space<smem>>
    %18 = vector.broadcast %17 : f32 to vector<1x16xf32>
    %19 = arith.addf %16, %18 : vector<1x16xf32>
    %c0_16 = arith.constant 0 : index
    %c0_17 = arith.constant 0 : index
    %c0_18 = arith.constant 0 : index
    %20 = vector.load %arg8[%c0_16, %c0_17, %c0_18] : memref<1x1x16xf32, #tpu.memory_space<vmem>>, vector<1x1x16xf32>
    %21 = vector.shape_cast %20 : vector<1x1x16xf32> to vector<1x16xf32>
    %22 = vector.shape_cast %19 : vector<1x16xf32> to vector<1x1x16xf32>
    tpu.vector_store %arg8[%c0_16, %c0_17, %c0_18], %22 {strides = array<i32>} : memref<1x1x16xf32, #tpu.memory_space<vmem>>, vector<1x1x16xf32>,
    return
  }
  func.func @transform_0(%arg0: i32) -> (i32, i32) {
    %c0_i32 = arith.constant 0 : i32
    %c0_i32_0 = arith.constant 0 : i32
    return %arg0, %c0_i32 : i32, i32
  }
  func.func @transform_1(%arg0: i32) -> (i32, i32) {
    %c0_i32 = arith.constant 0 : i32
    %c0_i32_0 = arith.constant 0 : i32
    %c0_i32_1 = arith.constant 0 : i32
    return %c0_i32, %c0_i32_0 : i32, i32
  }
  func.func @transform_2(%arg0: i32) -> (i32, i32) {
    %c0_i32 = arith.constant 0 : i32
    %c0_i32_0 = arith.constant 0 : i32
    %c0_i32_1 = arith.constant 0 : i32
    return %c0_i32, %c0_i32_0 : i32, i32
  }
  func.func @transform_3(%arg0: i32) -> (i32, i32) {
    %c0_i32 = arith.constant 0 : i32
    %c0_i32_0 = arith.constant 0 : i32
    %c0_i32_1 = arith.constant 0 : i32
    return %c0_i32, %c0_i32_0 : i32, i32
  }
  func.func @transform_4(%arg0: i32) -> (i32, i32) {
    %c0_i32 = arith.constant 0 : i32
    %c0_i32_0 = arith.constant 0 : i32
    %c0_i32_1 = arith.constant 0 : i32
    return %c0_i32, %c0_i32_0 : i32, i32
  }
  func.func @transform_5(%arg0: i32) -> (i32, i32) {
    %c0_i32 = arith.constant 0 : i32
    %c0_i32_0 = arith.constant 0 : i32
    %c0_i32_1 = arith.constant 0 : i32
    return %c0_i32, %c0_i32_0 : i32, i32
  }
  func.func @transform_6(%arg0: i32) -> i32 {
    %c0_i32 = arith.constant 0 : i32
    %c0_i32_0 = arith.constant 0 : i32
    return %c0_i32 : i32
  }
  func.func @transform_7(%arg0: i32) -> (i32, i32, i32) {
    %c0_i32 = arith.constant 0 : i32
    %c0_i32_0 = arith.constant 0 : i32
    %c0_i32_1 = arith.constant 0 : i32
    return %arg0, %c0_i32, %c0_i32_0 : i32, i32, i32
  }
}

</mosaic_0001>

<bundles_post_ra>
// kernel: scorer_forward.1
= control target key start
LH: loop header
LB: loop body
LE: loop exit
PB: predicated region body
PF: predicated region fallthrough
CT: control target
= control target key end

     0   :  { %13 = vsyncpa [#allocation4], 0  ;;  %s582_s0 = inlined_call_operand.vmem [shape: f32[16,4], index: 0, kind: input, shape index: {}]   ;;  %s583_s1 = inlined_call_operand.hbm [shape: f32[4,32], index: 1, kind: input, shape index: {}]   ;;  %s584_s2 = inlined_call_operand.hbm [shape: f32[1,32], index: 2, kind: input, shape index: {}]   ;;  %s585_s3 = inlined_call_operand.vmem [shape: f32[32,32], index: 3, kind: input, shape index: {}]   ;;  %s586_s4 = inlined_call_operand.hbm [shape: f32[1,32], index: 4, kind: input, shape index: {}]   ;;  %s587_s5 = inlined_call_operand.hbm [shape: f32[1,32], index: 5, kind: input, shape index: {}]   ;;  %s588_s6 = inlined_call_operand.<no memory space> [shape: f32[1], index: 6, kind: input, shape index: {}]   ;;  %s589_s7 = inlined_call_operand.vmem [shape: f32[1,1,16], index: 7, kind: output, shape index: {}]  }
   0x1   :  { %14 = vsyncpa [#allocation6], 0 }
   0x2   :  { %15 = vsyncpa [#allocation9], 0  ;;  %s495_s24 = smov [#allocation5]   ;;  %s496_s26 = smov [#allocation3]  }
   0x3   :  { %s34_s25 = sshll.u32 %s495_s24, 4  ;;  %s24_s27 = sshll.u32 %s496_s26, 4  ;;  %s35_s25 = int_to_ptr.vmem [resolvable:$true] %s34_s25  ;;  %s25_s27 = int_to_ptr.vmem [resolvable:$true] %s24_s27 }
   0x4   :  { %s417_s28 = scalar_lea.vmem %s35_s25, 16  ;;  %s421_s29 = scalar_lea.vmem %s35_s25, 32 }
   0x5   :  { %p418_p0 = scmp.ne.s32.totalorder %s35_s25, %s417_s28  ;;  %p422_p1 = scmp.lt.s32.totalorder %s35_s25, %s35_s25 }
   0x6   :  { %p423_p2 = scmp.lt.s32.totalorder %s421_s29, %s417_s28 }
   0x8   :  { %p424_p3 = por %p423_p2, %p422_p1 }
   0xa   :  { %p425_p4 = pnand %p424_p3, %p418_p0 }
   0xc   :  { %428 = shalt.err (!%p425_p4)
}
   0xd   :  { %37 = dma.hbm_to_vmem [thread:$0]  %s584_s2, 16, %s35_s25, [#allocation6]  }
   0xe   :  { %s437_s9 = scalar_lea.vmem %s25_s27, 64  ;;  %p442_p6 = scmp.lt.s32.totalorder %s25_s27, %s25_s27 }
   0xf   :  { %p438_p5 = scmp.ne.s32.totalorder %s25_s27, %s437_s9  ;;  %p443_p7 = scmp.lt.s32.totalorder %s437_s9, %s437_s9 }
  0x11   :  { %p444_p8 = por %p443_p7, %p442_p6 }
  0x13   :  { %p445_p9 = pnand %p444_p8, %p438_p5 }
  0x15   :  { %448 = shalt.err (!%p445_p9)
}
  0x16   :  { %27 = dma.hbm_to_vmem [thread:$0]  %s583_s1, 64, %s25_s27, [#allocation4]  }
  0x17   :  { %s497_s12 = smov [#allocation7]   ;;  %s498_s14 = smov [#allocation8]  }
  0x18   :  { %s46_s13 = sshll.u32 %s497_s12, 4  ;;  %s56_s15 = sshll.u32 %s498_s14, 4  ;;  %s47_s13 = int_to_ptr.vmem [resolvable:$true] %s46_s13  ;;  %s57_s15 = int_to_ptr.vmem [resolvable:$true] %s56_s15 }
  0x19   :  { %s457_s16 = scalar_lea.vmem %s47_s13, 16  ;;  %s461_s2 = scalar_lea.vmem %s47_s13, 32 }
  0x1a   :  { %p458_p10 = scmp.ne.s32.totalorder %s47_s13, %s457_s16  ;;  %p462_p11 = scmp.lt.s32.totalorder %s47_s13, %s47_s13 }
  0x1b   :  { %p463_p12 = scmp.lt.s32.totalorder %s461_s2, %s457_s16 }
  0x1d   :  { %p464_p13 = por %p463_p12, %p462_p11 }
  0x1f   :  { %p465_p0 = pnand %p464_p13, %p458_p10 }
  0x21   :  { %468 = shalt.err (!%p465_p0)
}
  0x22   :  { %49 = dma.hbm_to_vmem [thread:$0]  %s586_s4, 16, %s47_s13, [#allocation6]  }
  0x23   :  { %s477_s19 = scalar_lea.vmem %s57_s15, 16  ;;  %s481_s1 = scalar_lea.vmem %s57_s15, 32 }
  0x24   :  { %p478_p1 = scmp.ne.s32.totalorder %s57_s15, %s477_s19  ;;  %p482_p2 = scmp.lt.s32.totalorder %s57_s15, %s57_s15 }
  0x25   :  { %p483_p3 = scmp.lt.s32.totalorder %s481_s1, %s477_s19 }
  0x27   :  { %p484_p4 = por %p483_p3, %p482_p2 }
  0x29   :  { %p485_p5 = pnand %p484_p4, %p478_p1 }
  0x2b   :  { %488 = shalt.err (!%p485_p5)
}
  0x2c   :  { %59 = dma.hbm_to_vmem [thread:$0]  %s587_s5, 16, %s57_s15, [#allocation9]  }
  0x2d   :  { %489 = dma.done.wait [#allocation4], 64  }
  0x2e   :  { %490 = vsyncadd [#allocation4], 4294967232 }
  0x2f   :  { %491 = dma.done.wait [#allocation6], 32  }
  0x30   :  { %492 = vsyncadd [#allocation6], 4294967264 }
  0x31   :  { %493 = dma.done.wait [#allocation9], 16  }
  0x32   :  { %494 = vsyncadd [#allocation9], 4294967280  ;;  %vm91_vm0 = vcmask 1043456   ;;  %vm84_vm1 = vcmask 31744   ;;  %v76_v0 = vld [vmem:[#allocation3] sm:$0xf]  ;;  %v269_v23 = vstv %s588_s6 }
  0x33   :  { %v74_v1 = vld [vmem:[%s582_s0] sm:$0xff]  ;;  %v75_v2 = vld [vmem:[%s582_s0 + $0x8] sm:$0xff]  ;;  %380 = vmatprep.subr.msk.mxu0 %vm91_vm0, %v76_v0  ;;  %v175_v3 = vld [vmem:[%s585_s3 + $0x18] sm:$0xff]  ;;  %vm183_vm2 = vcmask 261120   ;;  %v499_v14 = vmov 0.0   ;;  %vm500_vm3 = vmmov 0  }
  0x34   :  { %382 = vmatprep.mubr.msk.f32.mxu0 %vm84_vm1, %v74_v1  ;;  %381 = vmatpush3.msk.msra.mxu0 %vm91_vm0, %v76_v0  ;;  %v174_v4 = vld [vmem:[%s585_s3 + $0x10] sm:$0xff]  ;;  %v173_v5 = vld [vmem:[%s585_s3 + $0x8] sm:$0xff]  ;;  %v172_v6 = vld [vmem:[%s585_s3] sm:$0xff]  ;;  %vm349_vm4 = vcmask 122880  }
  0x35   :  { %383 = vmatmul.mubr.msk.f32.vlgmr.msra.gmra.mxu0 %vm84_vm1, %v75_v2  ;;  %385 = vmatprep.subr.mxu1 %v175_v3  ;;  %v358_v7 = vld [vmem:[#allocation5] ss:$0 sm:$0xff]  ;;  %v362_v15 = vld [vmem:[#allocation7] ss:$0 sm:$0xff]  ;;  %v267_v22 = vld [vmem:[#allocation8] sm:$0x1] }
  0x36   :  { %386 = vmatpush3.msra.mxu1 %v175_v3  ;;  %396 = vmatprep.subr.mxu0 %v499_v14 }
  0x37   :  { %387 = vmatprep.subr.mxu1 %v174_v4  ;;  %400 = vmatprep.mubr.msk.f32.mxu0 %vm500_vm3, %v499_v14 }
  0x38   :  { %388 = vmatpush3.msra.mxu1 %v174_v4 }
  0x39   :  { %389 = vmatprep.subr.mxu1 %v173_v5 }
  0x3a   :  { %390 = vmatpush3.msra.mxu1 %v173_v5 }
  0x3b   :  { %391 = vmatprep.subr.mxu1 %v172_v6 }
  0x3c   :  { %392 = vmatpush3.msra.mxu1 %v172_v6 }
  0xf5   :  { %v384_v8 = vpop.f32.mrf.mxu0 }
  0xf6   :  { %v167_v9 = vadd.f32 %v384_v8, %v358_v7 }
  0xf7   :  { %v161_v10 = vpop.f32.mrf.mxu0 }
  0xf8   :  { %v162_v11 = vadd.f32 %v358_v7, %v161_v10  ;;  %v171_v13 = vmax.f32 %v167_v9, 0.0 }
  0xfa   :  { %v170_v12 = vmax.f32 %v162_v11, 0.0 }
  0xfc   :  { %393 = vmatprep.mubr.msk.f32.mxu1 %vm183_vm2, %v170_v12 }
  0xfd   :  { %394 = vmatmul.mubr.msk.f32.vlgmr.msra.gmra.mxu1 %vm183_vm2, %v171_v13 }
 0x1bd   :  { %v395_v16 = vpop.f32.mrf.mxu1 }
 0x1be   :  { %v262_v17 = vadd.f32 %v395_v16, %v362_v15 }
 0x1bf   :  { %v256_v18 = vpop.f32.mrf.mxu1 }
 0x1c0   :  { %v266_v19 = vmax.f32 %v262_v17, 0.0  ;;  %v257_v20 = vadd.f32 %v362_v15, %v256_v18 }
 0x1c2   :  { %397 = vmatpush3.xpose.msk.msra.mxu0 %vm183_vm2, %v266_v19  ;;  %v265_v21 = vmax.f32 %v257_v20, 0.0 }
 0x1c3   :  { %398 = vmatprep.subr.mxu0 %v499_v14 }
 0x1c6   :  { %399 = vmatpush3.xpose.msk.msra.mxu0 %vm183_vm2, %v265_v21 }
 0x1c9   :  { %401 = vmatmul.mubr.msk.f32.vlgmr.msra.gmra.mxu0 %vm183_vm2, %v267_v22 }
 0x289   :  { %v345_v24 = vpop.f32.mrf.mxu0 }
 0x28a   :  { %v346_v25 = vadd.f32 %v345_v24, %v269_v23 }
 0x28b   :  { %v402_v26 = vpop.f32.mrf.mxu0 }
 0x28c   :  { %350 = vst.msk [vmem:[%s589_s7] sm:$0x1] %vm349_vm4, %v346_v25 }
 0x28d   :  { %355 = vsyncpa [#allocation4], 1 }
 0x28e   :  { %356 = vsyncpa [#allocation6], 1 }
 0x28f   :  { %357 = vsyncpa [#allocation9], 1 }

</bundles_post_ra>
